<compile_context>
chip_gen: v6e
topology: v6e:2x2x1
jax: 0.10.0
libtpu: 0.0.40
codegen_flags: <defaults>
</compile_context>

<pallas_src>
import functools

import jax
import jax.numpy as jnp
from jax.experimental import pallas as pl
from jax.experimental.pallas import tpu as pltpu


_LANE = 128
_MAX_BLOCK_BYTES = 16 * 1024 * 1024      # per-array block ceiling on big-VMEM parts
_SMALL_PROBLEM_BYTES = 4 * 1024 * 1024   # below this, XLA's fused elementwise add wins


def _add_kernel(*refs):
    """refs = (in_ref_0, ..., in_ref_{N-1}, out_ref). Element-wise sum."""
    in_refs, out_ref = refs[:-1], refs[-1]
    acc = in_refs[0][...]
    for r in in_refs[1:]:
        acc = acc + r[...]
    out_ref[...] = acc


def _round_up(x: int, m: int) -> int:
    return ((x + m - 1) // m) * m


def _sublane_pack(dtype) -> int:
    # Sub-32-bit dtypes pack along sublanes: match the native packing.
    return {4: 8, 2: 16, 1: 32}.get(jnp.dtype(dtype).itemsize, 8)


def _tpu_vmem_and_cores():
    """Generation-aware VMEM capacity and TensorCore count (safe fallbacks)."""
    vmem = 64 * 1024 * 1024   # conservative default: v7x per-TC VMEM
    cores = 2                 # assume megacore if unknown (cheap hedge: costs
                              # at most a couple of extra ~0.35us steps on 1-TC)
    try:
        info = pltpu.get_tpu_info()
        vmem = int(getattr(info, "vmem_capacity_bytes", vmem) or vmem)
        for attr in ("num_cores", "core_count", "num_tensorcores",
                     "tensorcores_per_chip"):
            v = getattr(info, attr, None)
            if v:
                cores = int(v)
                break
    except Exception:
        pass
    return vmem, cores


def _plan(M: int, H: int, dtype, n_arrays: int):
    """Pick (rows, cols, tb, th, vmem_limit) for the flattened 2D problem."""
    itemsize = jnp.dtype(dtype).itemsize
    pack = _sublane_pack(dtype)
    vmem, cores = _tpu_vmem_and_cores()

    # Scoped-VMEM limit and budget: 2 buffers x (N inputs + 1 output) blocks
    # must fit with headroom.  128 MiB parts -> ~104/96 MiB; v7x -> 56/48 MiB.
    vmem_limit = max(32 * 1024 * 1024,
                     min(vmem - 8 * 1024 * 1024, 104 * 1024 * 1024))
    budget = vmem_limit - 8 * 1024 * 1024
    per_block_cap = max(pack * _LANE * itemsize,
                        min(_MAX_BLOCK_BYTES, budget // (2 * n_arrays)))

    T = M * H
    if T % _LANE == 0:
        # Lane-dense layout with FULL-ROW blocks -> contiguous HBM slabs,
        # unmasked wide stores, 1-D grid.
        if H % _LANE == 0 and pack * H * itemsize <= per_block_cap:
            rows, cols = M, H                 # keep the natural wide-row layout
        else:
            rows, cols = T // _LANE, _LANE    # fold odd/huge H into 128 lanes
        th = cols
    else:
        # Total size not lane-divisible: keep [M, H].
        rows, cols = M, H
        if pack * H * itemsize <= per_block_cap:
            th = H                            # full rows (masked only if H < 128)
        else:
            # Split hidden into 128-multiples (ragged last block) so one
            # row-group can never blow the VMEM budget.
            th = max(_LANE,
                     (per_block_cap // (pack * itemsize)) // _LANE * _LANE)

    # Sublane tile: fill the per-block budget with a dtype-aware packing
    # multiple; a full-extent row block is always legal and pad-free.
    tb = per_block_cap // max(th * itemsize, 1)
    tb = max(pack, (tb // pack) * pack)
    tb = min(tb, _round_up(rows, pack))
    if tb >= rows:
        tb = rows

    # Megacore load balancing: aim for >= 4 evenly sized blocks per core so
    # both TensorCores stay busy; skipped on single-core chips.
    if cores > 1 and rows > pack:
        nb_h = 1 if th == cols else pl.cdiv(cols, th)
        target = 4 * cores
        if pl.cdiv(rows, tb) * nb_h < target:
            tb_even = _round_up(pl.cdiv(rows, max(target // nb_h, 1)), pack)
            tb = max(pack, min(tb, tb_even))

    return rows, cols, tb, th, vmem_limit


def add3d(*inputs, force_pallas: bool = False):
    """Element-wise sum of N identically-shaped 3D arrays [B, S, H] on TPU."""
    assert len(inputs) >= 2, "Add3D needs at least two inputs"
    shape, dtype = inputs[0].shape, inputs[0].dtype
    for x in inputs[1:]:
        assert x.shape == shape and x.dtype == dtype
    assert len(shape) == 3, "Add3D expects 3D inputs [batch, seq, hidden]"

    B, S, H = shape
    M = B * S
    n_arrays = len(inputs) + 1  # N inputs + 1 output, all streamed through VMEM
    total_bytes = len(inputs) * M * H * jnp.dtype(dtype).itemsize

    # Small standalone adds: the pallas_call launch + pipeline prologue is a
    # pure regression vs XLA's fused elementwise add.
    if total_bytes < _SMALL_PROBLEM_BYTES and not force_pallas:
        return functools.reduce(jnp.add, inputs)

    rows, cols, tb, th, vmem_limit = _plan(M, H, dtype, n_arrays)
    flat = [x.reshape(rows, cols) for x in inputs]

    if th == cols:
        # Full-row blocks: 1-D grid walking strictly contiguous HBM slabs.
        grid = (pl.cdiv(rows, tb),)
        spec = pl.BlockSpec((tb, cols), lambda i: (i, 0))
        semantics = ("parallel",)
    else:
        grid = (pl.cdiv(rows, tb), pl.cdiv(cols, th))
        spec = pl.BlockSpec((tb, th), lambda i, j: (i, j))
        semantics = ("parallel", "parallel")

    out = pl.pallas_call(
        _add_kernel,
        out_shape=jax.ShapeDtypeStruct((rows, cols), dtype),
        grid_spec=pltpu.PrefetchScalarGridSpec(
            num_scalar_prefetch=0,
            grid=grid,
            in_specs=[spec] * len(inputs),
            out_specs=spec,
        ),
        compiler_params=pltpu.CompilerParams(
            dimension_semantics=semantics,
            vmem_limit_bytes=vmem_limit,
        ),
    )(*flat)
    return out.reshape(B, S, H)


if __name__ == "__main__":
    key = jax.random.PRNGKey(0)
    k1, k2, k3 = jax.random.split(key, 3)

    batch, seq, hidden = 2, 8, 32  # 3D inputs [batch, seq, hidden]
    x = jax.random.normal(k1, (batch, seq, hidden), dtype=jnp.float32)
    y = jax.random.normal(k2, (batch, seq, hidden), dtype=jnp.float32)
    z = jax.random.normal(k3, (batch, seq, hidden), dtype=jnp.float32)

    # force_pallas=True so the demo exercises the kernel despite the tiny size.
    out = add3d(x, y, z, force_pallas=True)
    jax.block_until_ready(out)

    expected = x + y + z
    assert out.shape == expected.shape
    assert jnp.allclose(out, expected, atol=1e-6, rtol=1e-6)

    print("KERNEL_OK")
</pallas_src>

<mosaic_0001>
module attributes {stable_mosaic.version = 11 : i64} {
  func.func @_add_kernel(%arg0: i32, %arg1: memref<4x128xf32, #tpu.memory_space<vmem>>, %arg2: memref<4x128xf32, #tpu.memory_space<vmem>>, %arg3: memref<4x128xf32, #tpu.memory_space<vmem>>, %arg4: memref<4x128xf32, #tpu.memory_space<vmem>>) attributes {dimension_semantics = [#tpu.dimension_semantics<parallel>], iteration_bounds = array<i64: 1>, scalar_prefetch = 0 : i64, scratch_operands = 0 : i64, tpu.core_type = #tpu.core_type<tc>, window_params = [{transform_indices = @transform_0, window_bounds = array<i64: 4, 128>}, {transform_indices = @transform_1, window_bounds = array<i64: 4, 128>}, {transform_indices = @transform_2, window_bounds = array<i64: 4, 128>}, {transform_indices = @transform_3, window_bounds = array<i64: 4, 128>}]} {
    %c0 = arith.constant 0 : index
    %c0_0 = arith.constant 0 : index
    %0 = vector.load %arg1[%c0, %c0_0] : memref<4x128xf32, #tpu.memory_space<vmem>>, vector<4x128xf32>
    %c0_1 = arith.constant 0 : index
    %c0_2 = arith.constant 0 : index
    %1 = vector.load %arg2[%c0_1, %c0_2] : memref<4x128xf32, #tpu.memory_space<vmem>>, vector<4x128xf32>
    %2 = arith.addf %0, %1 : vector<4x128xf32>
    %c0_3 = arith.constant 0 : index
    %c0_4 = arith.constant 0 : index
    %3 = vector.load %arg3[%c0_3, %c0_4] : memref<4x128xf32, #tpu.memory_space<vmem>>, vector<4x128xf32>
    %4 = arith.addf %2, %3 : vector<4x128xf32>
    %c0_5 = arith.constant 0 : index
    %c0_6 = arith.constant 0 : index
    %5 = vector.load %arg4[%c0_5, %c0_6] : memref<4x128xf32, #tpu.memory_space<vmem>>, vector<4x128xf32>
    tpu.vector_store %arg4[%c0_5, %c0_6], %4 {strides = array<i32>} : memref<4x128xf32, #tpu.memory_space<vmem>>, vector<4x128xf32>,
    return
  }
  func.func @transform_0(%arg0: i32) -> (i32, i32) {
    %c0_i32 = arith.constant 0 : i32
    %c0_i32_0 = arith.constant 0 : i32
    return %arg0, %c0_i32 : i32, i32
  }
  func.func @transform_1(%arg0: i32) -> (i32, i32) {
    %c0_i32 = arith.constant 0 : i32
    %c0_i32_0 = arith.constant 0 : i32
    return %arg0, %c0_i32 : i32, i32
  }
  func.func @transform_2(%arg0: i32) -> (i32, i32) {
    %c0_i32 = arith.constant 0 : i32
    %c0_i32_0 = arith.constant 0 : i32
    return %arg0, %c0_i32 : i32, i32
  }
  func.func @transform_3(%arg0: i32) -> (i32, i32) {
    %c0_i32 = arith.constant 0 : i32
    %c0_i32_0 = arith.constant 0 : i32
    return %arg0, %c0_i32 : i32, i32
  }
}

</mosaic_0001>

<bundles_post_ra>
// kernel: tpu_custom_call.1
= control target key start
LH: loop header
LB: loop body
LE: loop exit
PB: predicated region body
PF: predicated region fallthrough
CT: control target
= control target key end

     0   :  { %8 = vsyncpa [#allocation3], 0  ;;  %s198_s0 = inlined_call_operand.hbm [shape: f32[4,128], index: 0, kind: input, shape index: {}]   ;;  %s199_s1 = inlined_call_operand.hbm [shape: f32[4,128], index: 1, kind: input, shape index: {}]   ;;  %s200_s2 = inlined_call_operand.hbm [shape: f32[4,128], index: 2, kind: input, shape index: {}]   ;;  %s201_s3 = inlined_call_operand.hbm [shape: f32[4,128], index: 3, kind: output, shape index: {}]  }
   0x1   :  { %9 = vsyncpa [#allocation6], 0 }
   0x2   :  { %10 = vsyncpa [#allocation4], 0  ;;  %s162_s12 = smov [#allocation5]   ;;  %s163_s14 = smov [#allocation2]  }
   0x3   :  { %s27_s13 = sshll.u32 %s162_s12, 4  ;;  %s17_s15 = sshll.u32 %s163_s14, 4  ;;  %s28_s13 = int_to_ptr.vmem [resolvable:$true] %s27_s13  ;;  %s18_s15 = int_to_ptr.vmem [resolvable:$true] %s17_s15 }
   0x4   :  { %s84_s16 = scalar_lea.vmem %s28_s13, 64  ;;  %p89_p1 = scmp.lt.s32.totalorder %s28_s13, %s28_s13 }
   0x5   :  { %p85_p0 = scmp.ne.s32.totalorder %s28_s13, %s84_s16  ;;  %p90_p2 = scmp.lt.s32.totalorder %s84_s16, %s84_s16 }
   0x7   :  { %p91_p3 = por %p90_p2, %p89_p1 }
   0x9   :  { %p92_p4 = pnand %p91_p3, %p85_p0 }
   0xb   :  { %95 = shalt.err (!%p92_p4)
}
   0xc   :  { %30 = dma.hbm_to_vmem [thread:$0]  %s199_s1, 64, %s28_s13, [#allocation6]  }
   0xd   :  { %s104_s19 = scalar_lea.vmem %s18_s15, 64  ;;  %p109_p6 = scmp.lt.s32.totalorder %s18_s15, %s18_s15 }
   0xe   :  { %p105_p5 = scmp.ne.s32.totalorder %s18_s15, %s104_s19  ;;  %p110_p7 = scmp.lt.s32.totalorder %s104_s19, %s104_s19 }
  0x10   :  { %p111_p8 = por %p110_p7, %p109_p6 }
  0x12   :  { %p112_p9 = pnand %p111_p8, %p105_p5 }
  0x14   :  { %115 = shalt.err (!%p112_p9)
}
  0x15   :  { %20 = dma.hbm_to_vmem [thread:$0]  %s198_s0, 64, %s18_s15, [#allocation3]  }
  0x16   :  { %s164_s22 = smov [#allocation7]  }
  0x17   :  { %s37_s23 = sshll.u32 %s164_s22, 4  ;;  %s38_s23 = int_to_ptr.vmem [resolvable:$true] %s37_s23 }
  0x18   :  { %s124_s24 = scalar_lea.vmem %s38_s23, 64  ;;  %p129_p11 = scmp.lt.s32.totalorder %s38_s23, %s38_s23 }
  0x19   :  { %p125_p10 = scmp.ne.s32.totalorder %s38_s23, %s124_s24  ;;  %p130_p12 = scmp.lt.s32.totalorder %s124_s24, %s124_s24 }
  0x1b   :  { %p131_p13 = por %p130_p12, %p129_p11 }
  0x1d   :  { %p132_p0 = pnand %p131_p13, %p125_p10 }
  0x1f   :  { %135 = shalt.err (!%p132_p0)
}
  0x20   :  { %40 = dma.hbm_to_vmem [thread:$0]  %s200_s2, 64, %s38_s23, [#allocation6]  }
  0x21   :  { %156 = dma.done.wait [#allocation3], 64  }
  0x22   :  { %157 = vsyncadd [#allocation3], 4294967232 }
  0x23   :  { %158 = dma.done.wait [#allocation6], 128  }
  0x24   :  { %159 = vsyncadd [#allocation6], 4294967168  ;;  %s165_s26 = smov [#allocation8]   ;;  %v50_v0 = vld [vmem:[#allocation2] sm:$0xf] }
  0x25   :  { %s62_s0 = sshll.u32 %s165_s26, 4  ;;  %v51_v1 = vld [vmem:[#allocation5] sm:$0xf]  ;;  %v53_v2 = vld [vmem:[#allocation7] sm:$0xf]  ;;  %s63_s0 = int_to_ptr.vmem [resolvable:$true] %s62_s0 }
  0x26   :  { %v52_v3 = vadd.f32 %v51_v1, %v50_v0  ;;  %s136_s27 = scalar_lea.vmem %s63_s0, 64  ;;  %p141_p2 = scmp.lt.s32.totalorder %s63_s0, %s63_s0 }
  0x27   :  { %p137_p1 = scmp.ne.s32.totalorder %s63_s0, %s136_s27  ;;  %p142_p3 = scmp.lt.s32.totalorder %s136_s27, %s136_s27 }
  0x28   :  { %v54_v4 = vadd.f32 %v53_v2, %v52_v3 }
  0x29   :  { %p143_p4 = por %p142_p3, %p141_p2 }
  0x2a   :  { %55 = vst [vmem:[#allocation8] sm:$0xf] %v54_v4 }
  0x2b   :  { %p144_p5 = pnand %p143_p4, %p137_p1 }
  0x2d   :  { %147 = shalt.err (!%p144_p5)
}
  0x2e   :  { %65 = dma.vmem_to_hbm [thread:$0]  %s63_s0, 64, %s201_s3, [#allocation4]  }
  0x2f   :  { %160 = dma.done.wait [#allocation4], 64  }
  0x30   :  { %161 = vsyncadd [#allocation4], 4294967232 }
  0x31   :  { %69 = vsyncpa [#allocation3], 1 }
  0x32   :  { %70 = vsyncpa [#allocation6], 1 }
  0x33   :  { %71 = vsyncpa [#allocation4], 1 }

</bundles_post_ra>
